<compile_context>
chip_gen: v7x
topology: tpu7x:2x2x1
jax: 0.10.0
libtpu: 0.0.40
codegen_flags: <defaults>
</compile_context>

<pallas_src>
import math
import functools

import numpy as np
import jax
import jax.numpy as jnp
from jax import lax
from jax.experimental import pallas as pl
from jax.experimental.pallas import tpu as pltpu


# ----------------------------- kernel ---------------------------------------


def _roi_pool_kernel(params_ref, f_ref, o_ref, *, tk, img_w, inv_w):
    """params_ref: (8, n_pad) f32  rows 0..3 = y0,y1,x0,x1; row 4 = 1/area
       f_ref:      (tc, tk)  fmap slab (channels on sublane, flat HW on lane)
       o_ref:      (tc, n_pad) f32 output, accumulated across the HW grid axis."""
    k = pl.program_id(1)

    @pl.when(k == 0)
    def _init():
        o_ref[...] = jnp.zeros_like(o_ref)

    n_lanes = o_ref.shape[1]
    y0 = params_ref[0:1, :]          # (1, n_pad) row vectors, broadcast over sublanes
    y1 = params_ref[1:2, :]
    x0 = params_ref[2:3, :]
    x1 = params_ref[3:4, :]

    # Global flat HW index of each sublane row of this K tile, recovered to (h, w)
    # with f32 math (exact for hw < 2^22; see wrapper assert).  Pure VPU work that
    # co-issues with the MXU.
    idx = (k * tk + lax.broadcasted_iota(jnp.int32, (tk, n_lanes), 0)).astype(jnp.float32)
    h = jnp.floor((idx + 0.5) * inv_w)
    w = idx - h * img_w

    inside = (h >= y0) & (h < y1) & (w >= x0) & (w < x1)
    wt = jnp.where(inside, 1.0, 0.0).astype(f_ref.dtype)   # (tk, n_pad) 0/1 mask

    # (tc, tk) @ (tk, n_pad) -> (tc, n_pad) on the MXU, f32 accumulation.
    o_ref[...] += jnp.dot(f_ref[...], wt, preferred_element_type=jnp.float32)

    @pl.when(k == pl.num_programs(1) - 1)
    def _finalize():
        o_ref[...] = o_ref[...] * params_ref[4:5, :]        # 1/area scale in f32


# ----------------------------- host-side glue --------------------------------


def _pad_to(x, m):
    return ((x + m - 1) // m) * m


def _sub_patch_bounds(roi_batch, patch_num):
    """Mirrors the python round()/int() math of forward() (static, host side)."""
    per_edge = int(math.sqrt(patch_num))
    bounds = []
    for i in range(patch_num):
        for (xmin, ymin, xmax, ymax) in roi_batch:
            col = i % per_edge
            row = int(i / per_edge)
            x0 = round(xmin + col * (xmax - xmin) / per_edge)
            y0 = round(ymin + row * (ymax - ymin) / per_edge)
            x1 = round(xmin + col * (xmax - xmin) / per_edge + (xmax - xmin) / per_edge)
            y1 = round(ymin + row * (ymax - ymin) / per_edge + (ymax - ymin) / per_edge)
            bounds.append((int(x0), int(y0), int(x1), int(y1)))
    return bounds


def _build_roi_params(bounds, H, W, n_pad):
    """(8, n_pad) f32: rows 0..3 = y0,y1,x0,x1 normalized with python-slice semantics
    (negative / oversized rounded coords behave exactly like torch/numpy slicing);
    row 4 = 1/area (area clamped to >=1 so empty rounded sub-patches give 0, not NaN)."""
    params = np.zeros((8, n_pad), dtype=np.float32)
    for r, (x0, y0, x1, y1) in enumerate(bounds):
        ys, ye, _ = slice(y0, y1).indices(H)
        xs, xe, _ = slice(x0, x1).indices(W)
        area = max(ye - ys, 0) * max(xe - xs, 0)
        params[0, r], params[1, r] = ys, ye
        params[2, r], params[3, r] = xs, xe
        params[4, r] = 1.0 / max(area, 1)
    return params


def _pick_tc(C):
    """C tile: full C when small/unaligned, else largest multiple-of-8 divisor <= 256."""
    if C <= 256 or C % 8 != 0:
        return C
    best = 8
    for t in range(8, 257, 8):
        if C % t == 0:
            best = t
    return best


def _pick_tk(hw_pad, cap):
    """Largest multiple of 128 that divides hw_pad and is <= cap."""
    best = 128
    t = 128
    while t <= min(cap, hw_pad):
        if hw_pad % t == 0:
            best = t
        t += 128
    return best


def roi_pooling_forward(feature_map, roi_batch, patch_num):
    """feature_map: (C, H, W) jnp array (f32 or bf16); roi_batch: list of (xmin,ymin,xmax,ymax);
       patch_num: python int (perfect square).  Returns ((N, C, 1, 1) f32 array, bounds)."""
    C, H, W = feature_map.shape
    bounds = _sub_patch_bounds(roi_batch, patch_num)
    n = len(bounds)
    hw = H * W
    # TODO(synk): hw >= 2**22 would need exact integer h/w recovery in-kernel.
    assert hw < (1 << 22), "feature map too large for f32 index recovery"

    n_pad = _pad_to(max(n, 1), 128)                 # lane-dense output / MXU N dim
    hw_pad = _pad_to(hw, 128)
    tc = _pick_tc(C)

    # Conservative VMEM budget: fmap double buffer + in-kernel weight/iota temps + out.
    fbytes = jnp.dtype(feature_map.dtype).itemsize
    budget = 8 * 1024 * 1024
    denom = 2 * tc * fbytes + n_pad * (4 + fbytes)
    cap = max(128, min(2048, (budget - 2 * tc * n_pad * 4) // max(denom, 1)))
    cap = (cap // 128) * 128
    tk = _pick_tk(hw_pad, cap)
    grid = (C // tc if C % tc == 0 else 1, hw_pad // tk)

    params = jnp.asarray(_build_roi_params(bounds, H, W, n_pad))

    # (C, H, W) -> (C, HW): free reshape; zero-pad the HW tail only when misaligned.
    fmap2d = feature_map.reshape(C, hw)
    if hw_pad != hw:
        fmap2d = jnp.pad(fmap2d, ((0, 0), (0, hw_pad - hw)))

    kernel = functools.partial(_roi_pool_kernel, tk=tk, img_w=float(W), inv_w=1.0 / float(W))

    out = pl.pallas_call(
        kernel,
        out_shape=jax.ShapeDtypeStruct((C, n_pad), jnp.float32),
        grid_spec=pltpu.PrefetchScalarGridSpec(
            num_scalar_prefetch=0,
            grid=grid,
            in_specs=[
                pl.BlockSpec((8, n_pad), lambda c, k: (0, 0)),    # ROI params (tiny, read once)
                pl.BlockSpec((tc, tk), lambda c, k: (c, k)),      # fmap slab (read exactly once)
            ],
            out_specs=pl.BlockSpec((tc, n_pad), lambda c, k: (c, 0)),
        ),
        compiler_params=pltpu.CompilerParams(
            dimension_semantics=("parallel", "arbitrary"),
            vmem_limit_bytes=32 * 1024 * 1024),
    )(params, fmap2d)

    # (C, n_pad) -> (n, C, 1, 1)
    pooled = out[:, :n].T.reshape(n, C, 1, 1)
    return pooled, bounds


def _reference(feature_map_np, bounds):
    rows = []
    for (x0, y0, x1, y1) in bounds:
        region = feature_map_np[:, y0:y1, x0:x1]    # numpy slicing, like torch
        rows.append(region.mean(axis=(1, 2)))
    return np.stack(rows, axis=0)[:, :, None, None]


if __name__ == "__main__":
    key = jax.random.PRNGKey(0)
    C, H, W = 8, 16, 16
    # bf16 feature map -> native bf16 MXU path (f32 also works, unchanged code path).
    feature_map = jax.random.normal(key, (C, H, W), dtype=jnp.float32).astype(jnp.bfloat16)

    roi_batch = [
        (1.2, 2.3, 13.7, 14.1),
        (0.0, 0.0, 16.0, 16.0),
        (3.5, 1.0, 11.0, 9.5),
    ]
    patch_num = 4  # patch_num_per_edge = 2

    out, bounds = roi_pooling_forward(feature_map, roi_batch, patch_num)
    out = jax.block_until_ready(out)

    fm32 = np.asarray(feature_map).astype(np.float32)
    ref = _reference(fm32, bounds)
    assert out.shape == (patch_num * len(roi_batch), C, 1, 1), out.shape
    np.testing.assert_allclose(np.asarray(out), ref, rtol=1e-4, atol=1e-4)

    print("KERNEL_OK")
</pallas_src>

<mosaic_0001>
module attributes {stable_mosaic.version = 11 : i64} {
  func.func @_roi_pool_kernel(%arg0: i32, %arg1: i32, %arg2: memref<8x128xf32, #tpu.memory_space<vmem>>, %arg3: memref<8x256xbf16, #tpu.memory_space<vmem>>, %arg4: memref<8x128xf32, #tpu.memory_space<vmem>>) attributes {dimension_semantics = [#tpu.dimension_semantics<parallel>, #tpu.dimension_semantics<arbitrary>], iteration_bounds = array<i64: 1, 1>, scalar_prefetch = 0 : i64, scratch_operands = 0 : i64, tpu.core_type = #tpu.core_type<tc>, window_params = [{pipeline_mode = #tpu.pipeline_mode<synchronous>, transform_indices = @transform_0, window_bounds = array<i64: 8, 128>}, {transform_indices = @transform_1, window_bounds = array<i64: 8, 256>}, {transform_indices = @transform_2, window_bounds = array<i64: 8, 128>}]} {
    %c0_i32 = arith.constant 0 : i32
    %0 = arith.cmpi eq, %arg1, %c0_i32 : i32
    %1 = arith.extui %0 : i1 to i32
    %c0_i32_0 = arith.constant 0 : i32
    %2 = arith.cmpi ne, %1, %c0_i32_0 : i32
    scf.if %2 {
      %cst_18 = arith.constant 0.000000e+00 : f32
      %43 = vector.broadcast %cst_18 : f32 to vector<8x128xf32>
      %c0_19 = arith.constant 0 : index
      %c0_20 = arith.constant 0 : index
      %44 = vector.load %arg4[%c0_19, %c0_20] : memref<8x128xf32, #tpu.memory_space<vmem>>, vector<8x128xf32>
      tpu.vector_store %arg4[%c0_19, %c0_20], %43 {strides = array<i32>} : memref<8x128xf32, #tpu.memory_space<vmem>>, vector<8x128xf32>,
    } else {
    }
    %c0 = arith.constant 0 : index
    %c0_1 = arith.constant 0 : index
    %3 = vector.load %arg2[%c0, %c0_1] : memref<8x128xf32, #tpu.memory_space<vmem>>, vector<1x128xf32>
    %c1 = arith.constant 1 : index
    %c0_2 = arith.constant 0 : index
    %4 = vector.load %arg2[%c1, %c0_2] : memref<8x128xf32, #tpu.memory_space<vmem>>, vector<1x128xf32>
    %c2 = arith.constant 2 : index
    %c0_3 = arith.constant 0 : index
    %5 = vector.load %arg2[%c2, %c0_3] : memref<8x128xf32, #tpu.memory_space<vmem>>, vector<1x128xf32>
    %c3 = arith.constant 3 : index
    %c0_4 = arith.constant 0 : index
    %6 = vector.load %arg2[%c3, %c0_4] : memref<8x128xf32, #tpu.memory_space<vmem>>, vector<1x128xf32>
    %c256_i32 = arith.constant 256 : i32
    %7 = arith.muli %arg1, %c256_i32 : i32
    %8 = tpu.iota {dimensions = array<i32: 0>} : vector<256x128xi32>
    %9 = vector.broadcast %7 : i32 to vector<256x128xi32>
    %10 = arith.addi %9, %8 : vector<256x128xi32>
    %11 = arith.sitofp %10 : vector<256x128xi32> to vector<256x128xf32>
    %cst = arith.constant 5.000000e-01 : f32
    %12 = vector.broadcast %cst : f32 to vector<256x128xf32>
    %13 = arith.addf %11, %12 : vector<256x128xf32>
    %cst_5 = arith.constant 6.250000e-02 : f32
    %14 = vector.broadcast %cst_5 : f32 to vector<256x128xf32>
    %15 = arith.mulf %13, %14 : vector<256x128xf32>
    %16 = math.floor %15 : vector<256x128xf32>
    %cst_6 = arith.constant 1.600000e+01 : f32
    %17 = vector.broadcast %cst_6 : f32 to vector<256x128xf32>
    %18 = arith.mulf %16, %17 : vector<256x128xf32>
    %19 = arith.subf %11, %18 : vector<256x128xf32>
    %20 = vector.broadcast %3 : vector<1x128xf32> to vector<256x128xf32>
    %21 = arith.cmpf oge, %16, %20 : vector<256x128xf32>
    %22 = vector.broadcast %4 : vector<1x128xf32> to vector<256x128xf32>
    %23 = arith.cmpf olt, %16, %22 : vector<256x128xf32>
    %24 = arith.andi %21, %23 : vector<256x128xi1>
    %25 = vector.broadcast %5 : vector<1x128xf32> to vector<256x128xf32>
    %26 = arith.cmpf oge, %19, %25 : vector<256x128xf32>
    %27 = arith.andi %24, %26 : vector<256x128xi1>
    %28 = vector.broadcast %6 : vector<1x128xf32> to vector<256x128xf32>
    %29 = arith.cmpf olt, %19, %28 : vector<256x128xf32>
    %30 = arith.andi %27, %29 : vector<256x128xi1>
    %cst_7 = arith.constant 1.000000e+00 : f32
    %cst_8 = arith.constant 0.000000e+00 : f32
    %31 = vector.broadcast %cst_7 : f32 to vector<256x128xf32>
    %32 = vector.broadcast %cst_8 : f32 to vector<256x128xf32>
    %33 = arith.select %30, %31, %32 : vector<256x128xi1>, vector<256x128xf32>
    %34 = arith.truncf %33 : vector<256x128xf32> to vector<256x128xbf16>
    %c0_9 = arith.constant 0 : index
    %c0_10 = arith.constant 0 : index
    %35 = vector.load %arg4[%c0_9, %c0_10] : memref<8x128xf32, #tpu.memory_space<vmem>>, vector<8x128xf32>
    %c0_11 = arith.constant 0 : index
    %c0_12 = arith.constant 0 : index
    %36 = vector.load %arg3[%c0_11, %c0_12] : memref<8x256xbf16, #tpu.memory_space<vmem>>, vector<8x256xbf16>
    %cst_13 = arith.constant dense<0.000000e+00> : vector<8x128xf32>
    %37 = tpu.matmul %36, %34, %cst_13 {dimension_numbers = #tpu.dot_dimension_numbers<[1], [0], [0], [1], [0, 0, 1, 1], [], []>} : vector<8x256xbf16>, vector<256x128xbf16>, vector<8x128xf32> -> vector<8x128xf32>
    %38 = arith.addf %35, %37 : vector<8x128xf32>
    %c0_14 = arith.constant 0 : index
    %c0_15 = arith.constant 0 : index
    %39 = vector.load %arg4[%c0_14, %c0_15] : memref<8x128xf32, #tpu.memory_space<vmem>>, vector<8x128xf32>
    tpu.vector_store %arg4[%c0_14, %c0_15], %38 {strides = array<i32>} : memref<8x128xf32, #tpu.memory_space<vmem>>, vector<8x128xf32>,
    %c0_i32_16 = arith.constant 0 : i32
    %40 = arith.cmpi eq, %arg1, %c0_i32_16 : i32
    %41 = arith.extui %40 : i1 to i32
    %c0_i32_17 = arith.constant 0 : i32
    %42 = arith.cmpi ne, %41, %c0_i32_17 : i32
    scf.if %42 {
      %c0_18 = arith.constant 0 : index
      %c0_19 = arith.constant 0 : index
      %43 = vector.load %arg4[%c0_18, %c0_19] : memref<8x128xf32, #tpu.memory_space<vmem>>, vector<8x128xf32>
      %c4 = arith.constant 4 : index
      %c0_20 = arith.constant 0 : index
      %44 = vector.load %arg2[%c4, %c0_20] : memref<8x128xf32, #tpu.memory_space<vmem>>, vector<1x128xf32>
      %45 = vector.broadcast %44 : vector<1x128xf32> to vector<8x128xf32>
      %46 = arith.mulf %43, %45 : vector<8x128xf32>
      %c0_21 = arith.constant 0 : index
      %c0_22 = arith.constant 0 : index
      %47 = vector.load %arg4[%c0_21, %c0_22] : memref<8x128xf32, #tpu.memory_space<vmem>>, vector<8x128xf32>
      tpu.vector_store %arg4[%c0_21, %c0_22], %46 {strides = array<i32>} : memref<8x128xf32, #tpu.memory_space<vmem>>, vector<8x128xf32>,
    } else {
    }
    return
  }
  func.func @transform_0(%arg0: i32, %arg1: i32) -> (i32, i32) {
    %c0_i32 = arith.constant 0 : i32
    %c0_i32_0 = arith.constant 0 : i32
    %c0_i32_1 = arith.constant 0 : i32
    return %c0_i32, %c0_i32_0 : i32, i32
  }
  func.func @transform_1(%arg0: i32, %arg1: i32) -> (i32, i32) {
    %c0_i32 = arith.constant 0 : i32
    return %arg0, %arg1 : i32, i32
  }
  func.func @transform_2(%arg0: i32, %arg1: i32) -> (i32, i32) {
    %c0_i32 = arith.constant 0 : i32
    %c0_i32_0 = arith.constant 0 : i32
    return %arg0, %c0_i32 : i32, i32
  }
}

</mosaic_0001>

<bundles_post_ra>
// kernel: tpu_custom_call.1
= control target key start
LH: loop header
LB: loop body
LE: loop exit
PB: predicated region body
PF: predicated region fallthrough
CT: control target
= control target key end

     0   :  { %7 = vsyncpa [#allocation3], 0  ;;  %s1295_s0 = inlined_call_operand.hbm [shape: f32[8,128], index: 0, kind: input, shape index: {}]   ;;  %s1296_s1 = inlined_call_operand.hbm [shape: bf16[8,256], index: 1, kind: input, shape index: {}]   ;;  %s1297_s2 = inlined_call_operand.hbm [shape: f32[8,128], index: 2, kind: output, shape index: {}]  }
   0x1   :  { %8 = vsyncpa [#allocation6], 0 }
   0x2   :  { %9 = vsyncpa [#allocation4], 0  ;;  %s811_s9 = smov [#allocation2]   ;;  %s812_s11 = smov [#allocation5]  }
   0x3   :  { %s16_s10 = sshll.u32 %s811_s9, 4  ;;  %s26_s12 = sshll.u32 %s812_s11, 4  ;;  %s17_s10 = int_to_ptr.vmem [resolvable:$true] %s16_s10  ;;  %s27_s12 = int_to_ptr.vmem [resolvable:$true] %s26_s12 }
   0x4   :  { %s739_s15 = scalar_lea.hbm %s1295_s0, 128 }
   0x5   :  { %p740_p0 = scmp.ne.s32.totalorder %s1295_s0, %s739_s15  ;;  %p743_p1 = scmp.lt.u32.totalorder %s739_s15, %s1295_s0 }
   0x7   :  { %p745_p2 = pnand %p743_p1, %p740_p0 }
   0x9   :  { %748 = shalt.err (!%p745_p2)
}
   0xa   :  { %s749_s20 = scalar_lea.vmem %s17_s10, 128  ;;  %p754_p4 = scmp.lt.s32.totalorder %s17_s10, %s17_s10 }
   0xb   :  { %p750_p3 = scmp.ne.s32.totalorder %s17_s10, %s749_s20  ;;  %p755_p5 = scmp.lt.s32.totalorder %s749_s20, %s749_s20 }
   0xd   :  { %p756_p6 = por %p755_p5, %p754_p4 }
   0xf   :  { %p757_p7 = pnand %p756_p6, %p750_p3 }
  0x11   :  { %760 = shalt.err (!%p757_p7)
}
  0x12   :  { %19 = dma.hbm_to_vmem [thread:$0]  %s1295_s0, 128, %s17_s10, [#allocation3]  }
  0x13   :  { %s761_s25 = scalar_lea.hbm %s1296_s1, 128 }
  0x14   :  { %p762_p8 = scmp.ne.s32.totalorder %s1296_s1, %s761_s25  ;;  %p765_p9 = scmp.lt.u32.totalorder %s761_s25, %s1296_s1 }
  0x16   :  { %p767_p10 = pnand %p765_p9, %p762_p8 }
  0x18   :  { %770 = shalt.err (!%p767_p10)
}
  0x19   :  { %s771_s30 = scalar_lea.vmem %s27_s12, 128  ;;  %p776_p12 = scmp.lt.s32.totalorder %s27_s12, %s27_s12 }
  0x1a   :  { %p772_p11 = scmp.ne.s32.totalorder %s27_s12, %s771_s30  ;;  %p777_p13 = scmp.lt.s32.totalorder %s771_s30, %s771_s30 }
  0x1c   :  { %p778_p0 = por %p777_p13, %p776_p12 }
  0x1e   :  { %p779_p1 = pnand %p778_p0, %p772_p11 }
  0x20   :  { %782 = shalt.err (!%p779_p1)
}
  0x21   :  { %29 = dma.hbm_to_vmem [thread:$0]  %s1296_s1, 128, %s27_s12, [#allocation6]  }
  0x22   :  { %805 = dma.done.wait [#allocation3], 128  }
  0x23   :  { %806 = vsyncadd [#allocation3], 4294967168 }
  0x24   :  { %807 = dma.done.wait [#allocation6], 128  }
  0x25   :  { %808 = vsyncadd [#allocation6], 4294967168  ;;  %v47_v0 = vlaneseq  ;;  %v876_v22 = vld [vmem:[#allocation2] ss:$0 sm:$0xff]  ;;  %v882_v25 = vld [vmem:[#allocation2 + $0x1] ss:$0 sm:$0xff] }
  0x26   :  { %v894_v41 = vld [vmem:[#allocation2 + $0x2] ss:$0 sm:$0xff]  ;;  %v896_v42 = vld [vmem:[#allocation2 + $0x3] ss:$0 sm:$0xff]  ;;  %v813_v60 = vmov 1.0|1.0  }
  0x27   :  { %v854_v1 = vshrl.u32 %v47_v0, 7  ;;  %s814_s1 = smov [#allocation7]  }
  0x28   :  { %s661_s4 = sshll.u32 %s814_s1, 4  ;;  %s662_s4 = int_to_ptr.vmem [resolvable:$true] %s661_s4 }
  0x29   :  { %v64_v2 = vadd.s32 128, %v854_v1  ;;  %v65_v3 = vadd.s32 136, %v854_v1  ;;  %v49_v4 = vadd.s32 8, %v854_v1  ;;  %v113_v5 = vcvt.s32.f32 %v854_v1  ;;  %s783_s5 = scalar_lea.vmem %s662_s4, 128  ;;  %p788_p3 = scmp.lt.s32.totalorder %s662_s4, %s662_s4 }
  0x2a   :  { %v861_v6 = vadd.s32 144, %v854_v1  ;;  %v864_v7 = vadd.s32 152, %v854_v1  ;;  %v867_v8 = vadd.s32 16, %v854_v1  ;;  %v870_v9 = vadd.s32 24, %v854_v1  ;;  %p784_p2 = scmp.ne.s32.totalorder %s662_s4, %s783_s5  ;;  %p789_p4 = scmp.lt.s32.totalorder %s783_s5, %s783_s5 }
  0x2b   :  { %v129_v10 = vcvt.s32.f32 %v64_v2  ;;  %v130_v11 = vcvt.s32.f32 %v65_v3  ;;  %v114_v12 = vcvt.s32.f32 %v49_v4  ;;  %v145_v13 = vadd.f32 0.5, %v113_v5 }
  0x2c   :  { %v131_v14 = vcvt.s32.f32 %v861_v6  ;;  %v132_v15 = vcvt.s32.f32 %v864_v7  ;;  %v115_v16 = vcvt.s32.f32 %v867_v8  ;;  %v116_v17 = vcvt.s32.f32 %v870_v9  ;;  %p790_p5 = por %p789_p4, %p788_p3 }
  0x2d   :  { %v161_v18 = vadd.f32 0.5, %v129_v10  ;;  %v162_v19 = vadd.f32 0.5, %v130_v11  ;;  %v146_v20 = vadd.f32 0.5, %v114_v12  ;;  %v177_v21 = vmul.f32 0.0625, %v145_v13 }
  0x2e   :  { %v163_v23 = vadd.f32 0.5, %v131_v14  ;;  %v164_v24 = vadd.f32 0.5, %v132_v15  ;;  %v147_v32 = vadd.f32 0.5, %v115_v16  ;;  %v148_v36 = vadd.f32 0.5, %v116_v17  ;;  %p791_p6 = pnand %p790_p5, %p784_p2 }
  0x2f   :  { %v193_v26 = vmul.f32 0.0625, %v161_v18  ;;  %v194_v27 = vmul.f32 0.0625, %v162_v19  ;;  %v178_v28 = vmul.f32 0.0625, %v146_v20  ;;  %v209_v29 = vfloor.f32 %v177_v21 }
  0x30   :  { %v195_v30 = vmul.f32 0.0625, %v163_v23  ;;  %v196_v31 = vmul.f32 0.0625, %v164_v24  ;;  %v179_v52 = vmul.f32 0.0625, %v147_v32  ;;  %v180_v54 = vmul.f32 0.0625, %v148_v36 }
  0x31   :  { %v225_v33 = vfloor.f32 %v193_v26  ;;  %v226_v34 = vfloor.f32 %v194_v27  ;;  %v210_v35 = vfloor.f32 %v178_v28  ;;  %v241_v37 = vmul.f32 16.0, %v209_v29 }
  0x32   :  { %vm309_vm0 = vcmp.ge.f32.partialorder %v209_v29, %v876_v22  ;;  %vm345_vm1 = vcmp.lt.f32.partialorder %v209_v29, %v882_v25  ;;  %v890_v38 = vfloor.f32 %v195_v30  ;;  %v904_v45 = vfloor.f32 %v196_v31 }
  0x33   :  { %v257_v39 = vmul.f32 16.0, %v225_v33  ;;  %v258_v40 = vmul.f32 16.0, %v226_v34  ;;  %vm325_vm2 = vcmp.ge.f32.partialorder %v225_v33, %v876_v22  ;;  %vm326_vm3 = vcmp.ge.f32.partialorder %v226_v34, %v876_v22  ;;  %vm900_vm6 = vmand %vm309_vm0, %vm345_vm1 }
  0x34   :  { %vm361_vm4 = vcmp.lt.f32.partialorder %v225_v33, %v882_v25  ;;  %vm362_vm5 = vcmp.lt.f32.partialorder %v226_v34, %v882_v25  ;;  %v242_v43 = vmul.f32 16.0, %v210_v35  ;;  %vm310_vm8 = vcmp.ge.f32.partialorder %v210_v35, %v876_v22 }
  0x35   :  { %v289_v46 = vsub.f32 %v129_v10, %v257_v39  ;;  %v290_v47 = vsub.f32 %v130_v11, %v258_v40  ;;  %vm393_vm7 = vmand %vm325_vm2, %vm361_vm4  ;;  %vm346_vm9 = vcmp.lt.f32.partialorder %v210_v35, %v882_v25  ;;  %v273_v48 = vsub.f32 %v113_v5, %v241_v37 }
  0x36   :  { %vm394_vm10 = vmand %vm326_vm3, %vm362_vm5  ;;  %v274_v49 = vsub.f32 %v114_v12, %v242_v43  ;;  %v259_v51 = vmul.f32 16.0, %v890_v38  ;;  %v260_v53 = vmul.f32 16.0, %v904_v45  ;;  %v921_v55 = vadd.s32 160, %v854_v1 }
  0x37   :  { %vm429_vm11 = vcmp.ge.f32.partialorder %v289_v46, %v894_v41  ;;  %vm430_vm12 = vcmp.ge.f32.partialorder %v290_v47, %v894_v41  ;;  %vm497_vm13 = vcmp.lt.f32.partialorder %v289_v46, %v896_v42  ;;  %vm911_vm14 = vmand %vm310_vm8, %vm346_vm9  ;;  %vm498_vm0 = vcmp.lt.f32.partialorder %v290_v47, %v896_v42 }
  0x38   :  { %vm461_vm15 = vmand %vm393_vm7, %vm429_vm11  ;;  %vm413_vm3 = vcmp.ge.f32.partialorder %v273_v48, %v894_v41  ;;  %vm414_vm5 = vcmp.ge.f32.partialorder %v274_v49, %v894_v41  ;;  %v924_v56 = vadd.s32 168, %v854_v1  ;;  %v927_v57 = vadd.s32 32, %v854_v1 }
  0x39   :  { %vm462_vm1 = vmand %vm394_vm10, %vm430_vm12  ;;  %vm481_vm8 = vcmp.lt.f32.partialorder %v273_v48, %v896_v42  ;;  %v291_v58 = vsub.f32 %v131_v14, %v259_v51  ;;  %v211_v59 = vfloor.f32 %v179_v52  ;;  %vm482_vm10 = vcmp.lt.f32.partialorder %v274_v49, %v896_v42 }
  0x3a   :  { %vm529_vm2 = vmand %vm461_vm15, %vm497_vm13  ;;  %v292_v61 = vsub.f32 %v132_v15, %v260_v53  ;;  %v212_v62 = vfloor.f32 %v180_v54  ;;  %vm327_vm12 = vcmp.ge.f32.partialorder %v890_v38, %v876_v22  ;;  %v133_v63 = vcvt.s32.f32 %v921_v55 }
  0x3b   :  { %vm530_vm4 = vmand %vm462_vm1, %vm498_vm0  ;;  %v134_v0 = vcvt.s32.f32 %v924_v56  ;;  %v945_v2 = vadd.s32 40, %v854_v1  ;;  %vm328_vm13 = vcmp.ge.f32.partialorder %v904_v45, %v876_v22  ;;  %vm364_vm15 = vcmp.lt.f32.partialorder %v904_v45, %v882_v25 }
  0x3c   :  { %vm693_vm7 = vmpackc.low %vm530_vm4, %vm529_vm2  ;;  %v117_v4 = vcvt.s32.f32 %v927_v57  ;;  %vm431_vm1 = vcmp.ge.f32.partialorder %v291_v58, %v894_v41  ;;  %v243_v5 = vmul.f32 16.0, %v211_v59  ;;  %v165_v6 = vadd.f32 0.5, %v133_v63 }
  0x3d   :  { %710 = vmatprep.subr.msk.bf16.mxu0 %vm693_vm7, %v813_v60  ;;  %vm445_vm9 = vmand %vm900_vm6, %vm413_vm3  ;;  %v166_v7 = vadd.f32 0.5, %v134_v0  ;;  %vm432_vm3 = vcmp.ge.f32.partialorder %v292_v61, %v894_v41  ;;  %v244_v10 = vmul.f32 16.0, %v212_v62  ;;  %v118_v11 = vcvt.s32.f32 %v945_v2 }
  0x3e   :  { %vm446_vm11 = vmand %vm911_vm14, %vm414_vm5  ;;  %vm363_vm14 = vcmp.lt.f32.partialorder %v890_v38, %v882_v25  ;;  %v964_v12 = vadd.s32 176, %v854_v1  ;;  %v197_v13 = vmul.f32 0.0625, %v165_v6  ;;  %v149_v15 = vadd.f32 0.5, %v117_v4 }
  0x3f   :  { %vm947_vm6 = vmand %vm445_vm9, %vm481_vm8  ;;  %v198_v14 = vmul.f32 0.0625, %v166_v7  ;;  %v973_v18 = vadd.s32 184, %v854_v1  ;;  %vm499_vm7 = vcmp.lt.f32.partialorder %v291_v58, %v896_v42  ;;  %v150_v19 = vadd.f32 0.5, %v118_v11 }
  0x40   :  { %vm514_vm0 = vmand %vm446_vm11, %vm482_vm10  ;;  %vm500_vm9 = vcmp.lt.f32.partialorder %v292_v61, %v896_v42  ;;  %v275_v20 = vsub.f32 %v115_v16, %v243_v5  ;;  %v229_v21 = vfloor.f32 %v197_v13  ;;  %v276_v24 = vsub.f32 %v116_v17, %v244_v10 }
  0x41   :  { %vm677_vm2 = vmpackc.low %vm514_vm0, %vm947_vm6  ;;  %v230_v23 = vfloor.f32 %v198_v14  ;;  %v135_v26 = vcvt.s32.f32 %v964_v12  ;;  %vm347_vm6 = vcmp.lt.f32.partialorder %v211_v59, %v882_v25  ;;  %v181_v27 = vmul.f32 0.0625, %v149_v15 }
  0x42   :  { %711 = vmatpush3.bf16.msk.msra.mxu0 %vm677_vm2, %v813_v60  ;;  %vm395_vm4 = vmand %vm327_vm12, %vm363_vm14  ;;  %vm311_vm12 = vcmp.ge.f32.partialorder %v211_v59, %v876_v22  ;;  %v136_v28 = vcvt.s32.f32 %v973_v18  ;;  %vm312_vm14 = vcmp.ge.f32.partialorder %v212_v62, %v876_v22  ;;  %v261_v8 = vmul.f32 16.0, %v229_v21 }
  0x43   :  { %vm396_vm5 = vmand %vm328_vm13, %vm364_vm15  ;;  %vm348_vm15 = vcmp.lt.f32.partialorder %v212_v62, %v882_v25  ;;  %v182_v16 = vmul.f32 0.0625, %v150_v19  ;;  %v262_v9 = vmul.f32 16.0, %v230_v23  ;;  %v1001_v17 = vadd.s32 48, %v854_v1 }
  0x44   :  { %vm463_vm8 = vmand %vm395_vm4, %vm431_vm1  ;;  %vm415_vm1 = vcmp.ge.f32.partialorder %v275_v20, %v894_v41  ;;  %v167_v29 = vadd.f32 0.5, %v135_v26  ;;  %v1008_v30 = vadd.s32 56, %v854_v1  ;;  %v213_v31 = vfloor.f32 %v181_v27 }
  0x45   :  { %vm464_vm10 = vmand %vm396_vm5, %vm432_vm3  ;;  %vm416_vm3 = vcmp.ge.f32.partialorder %v276_v24, %v894_v41  ;;  %vm483_vm5 = vcmp.lt.f32.partialorder %v275_v20, %v896_v42  ;;  %v168_v32 = vadd.f32 0.5, %v136_v28  ;;  %v293_v33 = vsub.f32 %v133_v63, %v261_v8 }
  0x46   :  { %vm531_vm11 = vmand %vm463_vm8, %vm499_vm7  ;;  %vm484_vm8 = vcmp.lt.f32.partialorder %v276_v24, %v896_v42  ;;  %v214_v34 = vfloor.f32 %v182_v16  ;;  %v294_v35 = vsub.f32 %v134_v0, %v262_v9  ;;  %v119_v36 = vcvt.s32.f32 %v1001_v17 }
  0x47   :  { %vm532_vm13 = vmand %vm464_vm10, %vm500_vm9  ;;  %v199_v37 = vmul.f32 0.0625, %v167_v29  ;;  %v120_v38 = vcvt.s32.f32 %v1008_v30  ;;  %v245_v39 = vmul.f32 16.0, %v213_v31  ;;  %v200_v40 = vmul.f32 0.0625, %v168_v32 }
  0x48   :  { %vm695_vm0 = vmpackc.low %vm532_vm13, %vm531_vm11  ;;  %vm329_vm11 = vcmp.ge.f32.partialorder %v229_v21, %v876_v22  ;;  %vm330_vm13 = vcmp.ge.f32.partialorder %v230_v23, %v876_v22  ;;  %v246_v43 = vmul.f32 16.0, %v214_v34  ;;  %v1022_v44 = vadd.s32 192, %v854_v1 }
  0x49   :  { %712 = vmatprep.subr.msk.bf16.mxu0 %vm695_vm0, %v813_v60  ;;  %vm379_vm2 = vmand %vm311_vm12, %vm347_vm6  ;;  %vm365_vm12 = vcmp.lt.f32.partialorder %v229_v21, %v882_v25  ;;  %vm433_vm0 = vcmp.ge.f32.partialorder %v293_v33, %v894_v41  ;;  %v151_v45 = vadd.f32 0.5, %v119_v36  ;;  %v1029_v46 = vadd.s32 200, %v854_v1 }
  0x4a   :  { %vm380_vm4 = vmand %vm312_vm14, %vm348_vm15  ;;  %vm366_vm14 = vcmp.lt.f32.partialorder %v230_v23, %v882_v25  ;;  %v231_v47 = vfloor.f32 %v199_v37  ;;  %v152_v48 = vadd.f32 0.5, %v120_v38  ;;  %v277_v49 = vsub.f32 %v117_v4, %v245_v39 }
  0x4b   :  { %vm447_vm7 = vmand %vm379_vm2, %vm415_vm1  ;;  %vm434_vm2 = vcmp.ge.f32.partialorder %v294_v35, %v894_v41  ;;  %v232_v50 = vfloor.f32 %v200_v40  ;;  %v278_v51 = vsub.f32 %v118_v11, %v246_v43  ;;  %v137_v52 = vcvt.s32.f32 %v1022_v44 }
  0x4c   :  { %vm448_vm9 = vmand %vm380_vm4, %vm416_vm3  ;;  %vm501_vm4 = vcmp.lt.f32.partialorder %v293_v33, %v896_v42  ;;  %v183_v53 = vmul.f32 0.0625, %v151_v45  ;;  %v138_v54 = vcvt.s32.f32 %v1029_v46  ;;  %v263_v55 = vmul.f32 16.0, %v231_v47 }
  0x4d   :  { %vm515_vm10 = vmand %vm447_vm7, %vm483_vm5  ;;  %vm502_vm7 = vcmp.lt.f32.partialorder %v294_v35, %v896_v42  ;;  %v184_v56 = vmul.f32 0.0625, %v152_v48  ;;  %v264_v57 = vmul.f32 16.0, %v232_v50  ;;  %v1047_v58 = vadd.s32 64, %v854_v1 }
  0x4e   :  { %vm516_vm6 = vmand %vm448_vm9, %vm484_vm8  ;;  %v169_v59 = vadd.f32 0.5, %v137_v52  ;;  %v1054_v61 = vadd.s32 72, %v854_v1  ;;  %v215_v62 = vfloor.f32 %v183_v53  ;;  %v170_v63 = vadd.f32 0.5, %v138_v54 }
  0x4f   :  { %vm679_vm15 = vmpackc.low %vm516_vm6, %vm515_vm10  ;;  %vm313_vm10 = vcmp.ge.f32.partialorder %v213_v31, %v876_v22  ;;  %vm314_vm6 = vcmp.ge.f32.partialorder %v214_v34, %v876_v22  ;;  %v295_v0 = vsub.f32 %v135_v26, %v263_v55  ;;  %v216_v2 = vfloor.f32 %v184_v56 }
  0x50   :  { %713 = vmatpush3.bf16.msk.msra.mxu0 %vm679_vm15, %v813_v60  ;;  %vm397_vm1 = vmand %vm329_vm11, %vm365_vm12  ;;  %vm349_vm11 = vcmp.lt.f32.partialorder %v213_v31, %v882_v25  ;;  %vm417_vm15 = vcmp.ge.f32.partialorder %v277_v49, %v894_v41  ;;  %v296_v3 = vsub.f32 %v136_v28, %v264_v57  ;;  %v121_v4 = vcvt.s32.f32 %v1047_v58 }
  0x51   :  { %vm398_vm3 = vmand %vm330_vm13, %vm366_vm14  ;;  %vm350_vm13 = vcmp.lt.f32.partialorder %v214_v34, %v882_v25  ;;  %v201_v5 = vmul.f32 0.0625, %v169_v59  ;;  %v122_v6 = vcvt.s32.f32 %v1054_v61  ;;  %v247_v7 = vmul.f32 16.0, %v215_v62 }
  0x52   :  { %vm465_vm5 = vmand %vm397_vm1, %vm433_vm0  ;;  %vm418_vm1 = vcmp.ge.f32.partialorder %v278_v51, %v894_v41  ;;  %v202_v10 = vmul.f32 0.0625, %v170_v63  ;;  %v248_v11 = vmul.f32 16.0, %v216_v2  ;;  %v1072_v12 = vadd.s32 208, %v854_v1 }
  0x53   :  { %vm466_vm8 = vmand %vm398_vm3, %vm434_vm2  ;;  %vm485_vm3 = vcmp.lt.f32.partialorder %v277_v49, %v896_v42  ;;  %v153_v13 = vadd.f32 0.5, %v121_v4  ;;  %v1079_v14 = vadd.s32 216, %v854_v1  ;;  %v233_v15 = vfloor.f32 %v201_v5 }
  0x54   :  { %vm533_vm9 = vmand %vm465_vm5, %vm501_vm4  ;;  %vm486_vm5 = vcmp.lt.f32.partialorder %v278_v51, %v896_v42  ;;  %v154_v18 = vadd.f32 0.5, %v122_v6  ;;  %v279_v19 = vsub.f32 %v119_v36, %v247_v7  ;;  %v234_v20 = vfloor.f32 %v202_v10 }
  0x55   :  { %vm534_vm12 = vmand %vm466_vm8, %vm502_vm7  ;;  %v280_v21 = vsub.f32 %v120_v38, %v248_v11  ;;  %v139_v23 = vcvt.s32.f32 %v1072_v12  ;;  %v185_v24 = vmul.f32 0.0625, %v153_v13  ;;  %v140_v26 = vcvt.s32.f32 %v1079_v14 }
  0x56   :  { %vm697_vm14 = vmpackc.low %vm534_vm12, %vm533_vm9  ;;  %vm331_vm9 = vcmp.ge.f32.partialorder %v231_v47, %v876_v22  ;;  %vm332_vm12 = vcmp.ge.f32.partialorder %v232_v50, %v876_v22  ;;  %v265_v27 = vmul.f32 16.0, %v233_v15  ;;  %v186_v28 = vmul.f32 0.0625, %v154_v18 }
  0x57   :  { %714 = vmatprep.subr.msk.bf16.mxu0 %vm697_vm14, %v813_v60  ;;  %vm381_vm0 = vmand %vm313_vm10, %vm349_vm11  ;;  %vm367_vm10 = vcmp.lt.f32.partialorder %v231_v47, %v882_v25  ;;  %vm435_vm14 = vcmp.ge.f32.partialorder %v295_v0, %v894_v41  ;;  %v266_v8 = vmul.f32 16.0, %v234_v20  ;;  %v1097_v16 = vadd.s32 80, %v854_v1 }
  0x58   :  { %vm382_vm2 = vmand %vm314_vm6, %vm350_vm13  ;;  %vm368_vm6 = vcmp.lt.f32.partialorder %v232_v50, %v882_v25  ;;  %v171_v9 = vadd.f32 0.5, %v139_v23  ;;  %v1104_v17 = vadd.s32 88, %v854_v1  ;;  %v217_v29 = vfloor.f32 %v185_v24 }
  0x59   :  { %vm449_vm4 = vmand %vm381_vm0, %vm417_vm15  ;;  %vm436_vm0 = vcmp.ge.f32.partialorder %v296_v3, %v894_v41  ;;  %v172_v30 = vadd.f32 0.5, %v140_v26  ;;  %v297_v31 = vsub.f32 %v137_v52, %v265_v27  ;;  %v218_v32 = vfloor.f32 %v186_v28 }
  0x5a   :  { %vm450_vm7 = vmand %vm382_vm2, %vm418_vm1  ;;  %vm503_vm2 = vcmp.lt.f32.partialorder %v295_v0, %v896_v42  ;;  %v298_v33 = vsub.f32 %v138_v54, %v266_v8  ;;  %v123_v34 = vcvt.s32.f32 %v1097_v16  ;;  %v203_v35 = vmul.f32 0.0625, %v171_v9 }
  0x5b   :  { %vm517_vm8 = vmand %vm449_vm4, %vm485_vm3  ;;  %vm504_vm4 = vcmp.lt.f32.partialorder %v296_v3, %v896_v42  ;;  %v124_v36 = vcvt.s32.f32 %v1104_v17  ;;  %v249_v37 = vmul.f32 16.0, %v217_v29  ;;  %v204_v38 = vmul.f32 0.0625, %v172_v30 }
  0x5c   :  { %vm518_vm11 = vmand %vm450_vm7, %vm486_vm5  ;;  %v250_v39 = vmul.f32 16.0, %v218_v32  ;;  %v1122_v40 = vadd.s32 224, %v854_v1  ;;  %v155_v43 = vadd.f32 0.5, %v123_v34  ;;  %v1129_v44 = vadd.s32 232, %v854_v1 }
  0x5d   :  { %vm681_vm13 = vmpackc.low %vm518_vm11, %vm517_vm8  ;;  %vm315_vm8 = vcmp.ge.f32.partialorder %v215_v62, %v876_v22  ;;  %vm316_vm11 = vcmp.ge.f32.partialorder %v216_v2, %v876_v22  ;;  %v235_v45 = vfloor.f32 %v203_v35  ;;  %v156_v46 = vadd.f32 0.5, %v124_v36 }
  0x5e   :  { %715 = vmatpush3.bf16.msk.msra.mxu0 %vm681_vm13, %v813_v60  ;;  %vm399_vm15 = vmand %vm331_vm9, %vm367_vm10  ;;  %vm351_vm9 = vcmp.lt.f32.partialorder %v215_v62, %v882_v25  ;;  %vm419_vm13 = vcmp.ge.f32.partialorder %v279_v19, %v894_v41  ;;  %v281_v47 = vsub.f32 %v121_v4, %v249_v37  ;;  %v236_v48 = vfloor.f32 %v204_v38 }
  0x5f   :  { %vm400_vm1 = vmand %vm332_vm12, %vm368_vm6  ;;  %vm352_vm12 = vcmp.lt.f32.partialorder %v216_v2, %v882_v25  ;;  %v282_v49 = vsub.f32 %v122_v6, %v250_v39  ;;  %v141_v50 = vcvt.s32.f32 %v1122_v40  ;;  %v187_v51 = vmul.f32 0.0625, %v155_v43  ;;  %v1172_v6 = vld [vmem:[#allocation5] sm:$0xff] }
  0x60   :  { %vm467_vm3 = vmand %vm399_vm15, %vm435_vm14  ;;  %vm420_vm15 = vcmp.ge.f32.partialorder %v280_v21, %v894_v41  ;;  %v142_v52 = vcvt.s32.f32 %v1129_v44  ;;  %v267_v53 = vmul.f32 16.0, %v235_v45  ;;  %v188_v54 = vmul.f32 0.0625, %v156_v46 }
  0x61   :  { %vm468_vm5 = vmand %vm400_vm1, %vm436_vm0  ;;  %vm487_vm1 = vcmp.lt.f32.partialorder %v279_v19, %v896_v42  ;;  %v268_v55 = vmul.f32 16.0, %v236_v48  ;;  %v1147_v56 = vadd.s32 96, %v854_v1  ;;  %v173_v57 = vadd.f32 0.5, %v141_v50 }
  0x62   :  { %vm535_vm7 = vmand %vm467_vm3, %vm503_vm2  ;;  %vm488_vm3 = vcmp.lt.f32.partialorder %v280_v21, %v896_v42  ;;  %v1154_v58 = vadd.s32 104, %v854_v1  ;;  %v219_v59 = vfloor.f32 %v187_v51  ;;  %v174_v61 = vadd.f32 0.5, %v142_v52 }
  0x63   :  { %vm536_vm10 = vmand %vm468_vm5, %vm504_vm4  ;;  %v299_v62 = vsub.f32 %v139_v23, %v267_v53  ;;  %v220_v63 = vfloor.f32 %v188_v54  ;;  %v300_v0 = vsub.f32 %v140_v26, %v268_v55  ;;  %v125_v2 = vcvt.s32.f32 %v1147_v56 }
  0x64   :  { %vm699_vm6 = vmpackc.low %vm536_vm10, %vm535_vm7  ;;  %vm333_vm7 = vcmp.ge.f32.partialorder %v233_v15, %v876_v22  ;;  %vm334_vm10 = vcmp.ge.f32.partialorder %v234_v20, %v876_v22  ;;  %v205_v4 = vmul.f32 0.0625, %v173_v57  ;;  %v126_v5 = vcvt.s32.f32 %v1154_v58 }
  0x65   :  { %716 = vmatprep.subr.msk.bf16.mxu0 %vm699_vm6, %v813_v60  ;;  %vm383_vm14 = vmand %vm315_vm8, %vm351_vm9  ;;  %vm369_vm8 = vcmp.lt.f32.partialorder %v233_v15, %v882_v25  ;;  %vm437_vm6 = vcmp.ge.f32.partialorder %v297_v31, %v894_v41  ;;  %v251_v7 = vmul.f32 16.0, %v219_v59  ;;  %v206_v10 = vmul.f32 0.0625, %v174_v61 }
  0x66   :  { %vm384_vm0 = vmand %vm316_vm11, %vm352_vm12  ;;  %vm370_vm11 = vcmp.lt.f32.partialorder %v234_v20, %v882_v25  ;;  %v252_v11 = vmul.f32 16.0, %v220_v63  ;;  %v1180_v12 = vadd.s32 240, %v854_v1  ;;  %v157_v13 = vadd.f32 0.5, %v125_v2 }
  0x67   :  { %vm451_vm2 = vmand %vm383_vm14, %vm419_vm13  ;;  %vm438_vm14 = vcmp.ge.f32.partialorder %v298_v33, %v894_v41  ;;  %v1189_v14 = vadd.s32 248, %v854_v1  ;;  %v676_v15 = vcombine.high %v1172_v6, %v1172_v6  ;;  %v237_v18 = vfloor.f32 %v205_v4 }
  0x68   :  { %vm452_vm4 = vmand %vm384_vm0, %vm420_vm15  ;;  %vm505_vm0 = vcmp.lt.f32.partialorder %v297_v31, %v896_v42  ;;  %v158_v19 = vadd.f32 0.5, %v126_v5  ;;  %v283_v20 = vsub.f32 %v123_v34, %v251_v7  ;;  %v238_v21 = vfloor.f32 %v206_v10 }
  0x69   :  { %vm519_vm5 = vmand %vm451_vm2, %vm487_vm1  ;;  %vm506_vm2 = vcmp.lt.f32.partialorder %v298_v33, %v896_v42  ;;  %634 = vmatprep.mubr.bf16.mxu0 %v676_v15  ;;  %v284_v23 = vsub.f32 %v124_v36, %v252_v11  ;;  %v143_v24 = vcvt.s32.f32 %v1180_v12  ;;  %v189_v26 = vmul.f32 0.0625, %v157_v13 }
  0x6a   :  { %vm520_vm9 = vmand %vm452_vm4, %vm488_vm3  ;;  %v144_v27 = vcvt.s32.f32 %v1189_v14  ;;  %v269_v28 = vmul.f32 16.0, %v237_v18  ;;  %v190_v8 = vmul.f32 0.0625, %v158_v19  ;;  %v270_v16 = vmul.f32 16.0, %v238_v21 }
  0x6b   :  { %vm683_vm12 = vmpackc.low %vm520_vm9, %vm519_vm5  ;;  %vm317_vm5 = vcmp.ge.f32.partialorder %v217_v29, %v876_v22  ;;  %vm318_vm9 = vcmp.ge.f32.partialorder %v218_v32, %v876_v22  ;;  %v1209_v9 = vadd.s32 112, %v854_v1  ;;  %v175_v17 = vadd.f32 0.5, %v143_v24 }
  0x6c   :  { %717 = vmatpush3.bf16.msk.msra.mxu0 %vm683_vm12, %v813_v60  ;;  %vm401_vm13 = vmand %vm333_vm7, %vm369_vm8  ;;  %vm353_vm7 = vcmp.lt.f32.partialorder %v217_v29, %v882_v25  ;;  %vm421_vm12 = vcmp.ge.f32.partialorder %v281_v47, %v894_v41  ;;  %v1216_v29 = vadd.s32 120, %v854_v1  ;;  %v221_v30 = vfloor.f32 %v189_v26 }
  0x6d   :  { %vm402_vm15 = vmand %vm334_vm10, %vm370_vm11  ;;  %vm354_vm10 = vcmp.lt.f32.partialorder %v218_v32, %v882_v25  ;;  %v176_v31 = vadd.f32 0.5, %v144_v27  ;;  %v301_v32 = vsub.f32 %v141_v50, %v269_v28  ;;  %v222_v33 = vfloor.f32 %v190_v8 }
  0x6e   :  { %vm469_vm1 = vmand %vm401_vm13, %vm437_vm6  ;;  %vm422_vm13 = vcmp.ge.f32.partialorder %v282_v49, %v894_v41  ;;  %v302_v34 = vsub.f32 %v142_v52, %v270_v16  ;;  %v127_v1 = vcvt.s32.f32 %v1209_v9  ;;  %v207_v35 = vmul.f32 0.0625, %v175_v17 }
  0x6f   :  { %vm470_vm3 = vmand %vm402_vm15, %vm438_vm14  ;;  %vm489_vm15 = vcmp.lt.f32.partialorder %v281_v47, %v896_v42  ;;  %v128_v36 = vcvt.s32.f32 %v1216_v29  ;;  %v253_v37 = vmul.f32 16.0, %v221_v30  ;;  %v208_v38 = vmul.f32 0.0625, %v176_v31 }
  0x70   :  { %vm537_vm4 = vmand %vm469_vm1, %vm505_vm0  ;;  %vm490_vm1 = vcmp.lt.f32.partialorder %v282_v49, %v896_v42  ;;  %v254_v39 = vmul.f32 16.0, %v222_v33  ;;  %v159_v40 = vadd.f32 0.5, %v127_v1  ;;  %v239_v43 = vfloor.f32 %v207_v35 }
  0x71   :  { %vm538_vm8 = vmand %vm470_vm3, %vm506_vm2  ;;  %v160_v44 = vadd.f32 0.5, %v128_v36  ;;  %v240_v46 = vfloor.f32 %v208_v38 }
  0x72   :  { %vm701_vm11 = vmpackc.low %vm538_vm8, %vm537_vm4  ;;  %vm335_vm4 = vcmp.ge.f32.partialorder %v235_v45, %v876_v22  ;;  %vm336_vm8 = vcmp.ge.f32.partialorder %v236_v48, %v876_v22  ;;  %v286_v47 = vsub.f32 %v126_v5, %v254_v39  ;;  %v271_v49 = vmul.f32 16.0, %v239_v43 }
  0x73   :  { %718 = vmatprep.subr.msk.bf16.mxu0 %vm701_vm11, %v813_v60  ;;  %vm385_vm6 = vmand %vm317_vm5, %vm353_vm7  ;;  %vm371_vm5 = vcmp.lt.f32.partialorder %v235_v45, %v882_v25  ;;  %vm439_vm11 = vcmp.ge.f32.partialorder %v299_v62, %v894_v41  ;;  %v285_v45 = vsub.f32 %v125_v2, %v253_v37  ;;  %v192_v50 = vmul.f32 0.0625, %v160_v44 }
  0x74   :  { %vm386_vm14 = vmand %vm318_vm9, %vm354_vm10  ;;  %vm372_vm9 = vcmp.lt.f32.partialorder %v236_v48, %v882_v25  ;;  %v191_v48 = vmul.f32 0.0625, %v159_v40  ;;  %v272_v51 = vmul.f32 16.0, %v240_v46  ;;  %v303_v53 = vsub.f32 %v143_v24, %v271_v49 }
  0x75   :  { %vm453_vm0 = vmand %vm385_vm6, %vm421_vm12  ;;  %vm440_vm6 = vcmp.ge.f32.partialorder %v300_v0, %v894_v41  ;;  %v224_v54 = vfloor.f32 %v192_v50 }
  0x76   :  { %vm454_vm2 = vmand %vm386_vm14, %vm422_vm13  ;;  %vm507_vm14 = vcmp.lt.f32.partialorder %v299_v62, %v896_v42  ;;  %v223_v52 = vfloor.f32 %v191_v48  ;;  %v304_v55 = vsub.f32 %v144_v27, %v272_v51 }
  0x77   :  { %vm1165_vm3 = vmand %vm453_vm0, %vm489_vm15  ;;  %vm508_vm0 = vcmp.lt.f32.partialorder %v300_v0, %v896_v42  ;;  %v256_v57 = vmul.f32 16.0, %v224_v54  ;;  %v709_v0 = vld [vmem:[#allocation2 + $0x4] ss:$0 sm:$0xff] }
  0x78   :  { %vm522_vm7 = vmand %vm454_vm2, %vm490_vm1  ;;  %v255_v56 = vmul.f32 16.0, %v223_v52 }
  0x79   :  { %vm685_vm10 = vmpackc.low %vm522_vm7, %vm1165_vm3  ;;  %vm319_vm3 = vcmp.ge.f32.partialorder %v219_v59, %v876_v22  ;;  %vm320_vm7 = vcmp.ge.f32.partialorder %v220_v63, %v876_v22 }
  0x7a   :  { %719 = vmatpush3.bf16.msk.msra.mxu0 %vm685_vm10, %v813_v60  ;;  %vm403_vm12 = vmand %vm335_vm4, %vm371_vm5  ;;  %vm355_vm4 = vcmp.lt.f32.partialorder %v219_v59, %v882_v25  ;;  %vm423_vm10 = vcmp.ge.f32.partialorder %v283_v20, %v894_v41  ;;  %v287_v58 = vsub.f32 %v127_v1, %v255_v56  ;;  %v288_v59 = vsub.f32 %v128_v36, %v256_v57 }
  0x7b   :  { %vm404_vm13 = vmand %vm336_vm8, %vm372_vm9  ;;  %vm356_vm8 = vcmp.lt.f32.partialorder %v220_v63, %v882_v25 }
  0x7c   :  { %vm471_vm15 = vmand %vm403_vm12, %vm439_vm11  ;;  %vm424_vm12 = vcmp.ge.f32.partialorder %v284_v23, %v894_v41 }
  0x7d   :  { %vm472_vm1 = vmand %vm404_vm13, %vm440_vm6  ;;  %vm491_vm13 = vcmp.lt.f32.partialorder %v283_v20, %v896_v42 }
  0x7e   :  { %vm539_vm2 = vmand %vm471_vm15, %vm507_vm14  ;;  %vm492_vm15 = vcmp.lt.f32.partialorder %v284_v23, %v896_v42 }
  0x7f   :  { %vm540_vm5 = vmand %vm472_vm1, %vm508_vm0 }
  0x80   :  { %vm703_vm9 = vmpackc.low %vm540_vm5, %vm539_vm2  ;;  %vm337_vm2 = vcmp.ge.f32.partialorder %v237_v18, %v876_v22  ;;  %vm338_vm5 = vcmp.ge.f32.partialorder %v238_v21, %v876_v22 }
  0x81   :  { %720 = vmatprep.subr.msk.bf16.mxu0 %vm703_vm9, %v813_v60  ;;  %vm387_vm11 = vmand %vm319_vm3, %vm355_vm4  ;;  %vm373_vm3 = vcmp.lt.f32.partialorder %v237_v18, %v882_v25  ;;  %vm441_vm9 = vcmp.ge.f32.partialorder %v301_v32, %v894_v41 }
  0x82   :  { %vm388_vm6 = vmand %vm320_vm7, %vm356_vm8  ;;  %vm374_vm7 = vcmp.lt.f32.partialorder %v238_v21, %v882_v25 }
  0x83   :  { %vm455_vm14 = vmand %vm387_vm11, %vm423_vm10  ;;  %vm442_vm11 = vcmp.ge.f32.partialorder %v302_v34, %v894_v41 }
  0x84   :  { %vm456_vm0 = vmand %vm388_vm6, %vm424_vm12  ;;  %vm509_vm6 = vcmp.lt.f32.partialorder %v301_v32, %v896_v42 }
  0x85   :  { %vm523_vm1 = vmand %vm455_vm14, %vm491_vm13  ;;  %vm510_vm14 = vcmp.lt.f32.partialorder %v302_v34, %v896_v42 }
  0x86   :  { %vm524_vm4 = vmand %vm456_vm0, %vm492_vm15 }
  0x87   :  { %vm687_vm8 = vmpackc.low %vm524_vm4, %vm523_vm1  ;;  %vm321_vm1 = vcmp.ge.f32.partialorder %v221_v30, %v876_v22  ;;  %vm322_vm4 = vcmp.ge.f32.partialorder %v222_v33, %v876_v22 }
  0x88   :  { %721 = vmatpush3.bf16.msk.msra.mxu0 %vm687_vm8, %v813_v60  ;;  %vm405_vm10 = vmand %vm337_vm2, %vm373_vm3  ;;  %vm357_vm2 = vcmp.lt.f32.partialorder %v221_v30, %v882_v25  ;;  %vm425_vm8 = vcmp.ge.f32.partialorder %v285_v45, %v894_v41 }
  0x89   :  { %vm406_vm12 = vmand %vm338_vm5, %vm374_vm7  ;;  %vm358_vm5 = vcmp.lt.f32.partialorder %v222_v33, %v882_v25 }
  0x8a   :  { %vm473_vm13 = vmand %vm405_vm10, %vm441_vm9  ;;  %vm426_vm10 = vcmp.ge.f32.partialorder %v286_v47, %v894_v41 }
  0x8b   :  { %vm474_vm15 = vmand %vm406_vm12, %vm442_vm11  ;;  %vm493_vm12 = vcmp.lt.f32.partialorder %v285_v45, %v896_v42 }
  0x8c   :  { %vm541_vm0 = vmand %vm473_vm13, %vm509_vm6  ;;  %vm494_vm13 = vcmp.lt.f32.partialorder %v286_v47, %v896_v42 }
  0x8d   :  { %vm542_vm3 = vmand %vm474_vm15, %vm510_vm14 }
  0x8e   :  { %vm705_vm7 = vmpackc.low %vm542_vm3, %vm541_vm0  ;;  %vm339_vm0 = vcmp.ge.f32.partialorder %v239_v43, %v876_v22  ;;  %vm340_vm3 = vcmp.ge.f32.partialorder %v240_v46, %v876_v22 }
  0x8f   :  { %722 = vmatprep.subr.msk.bf16.mxu0 %vm705_vm7, %v813_v60  ;;  %vm389_vm9 = vmand %vm321_vm1, %vm357_vm2  ;;  %vm375_vm1 = vcmp.lt.f32.partialorder %v239_v43, %v882_v25  ;;  %vm443_vm7 = vcmp.ge.f32.partialorder %v303_v53, %v894_v41 }
  0x90   :  { %vm390_vm11 = vmand %vm322_vm4, %vm358_vm5  ;;  %vm376_vm4 = vcmp.lt.f32.partialorder %v240_v46, %v882_v25 }
  0x91   :  { %vm457_vm6 = vmand %vm389_vm9, %vm425_vm8  ;;  %vm444_vm9 = vcmp.ge.f32.partialorder %v304_v55, %v894_v41 }
  0x92   :  { %vm458_vm14 = vmand %vm390_vm11, %vm426_vm10  ;;  %vm511_vm11 = vcmp.lt.f32.partialorder %v303_v53, %v896_v42 }
  0x93   :  { %vm525_vm15 = vmand %vm457_vm6, %vm493_vm12  ;;  %vm512_vm6 = vcmp.lt.f32.partialorder %v304_v55, %v896_v42 }
  0x94   :  { %vm526_vm2 = vmand %vm458_vm14, %vm494_vm13 }
  0x95   :  { %vm689_vm5 = vmpackc.low %vm526_vm2, %vm525_vm15  ;;  %vm323_vm15 = vcmp.ge.f32.partialorder %v223_v52, %v876_v22  ;;  %vm324_vm2 = vcmp.ge.f32.partialorder %v224_v54, %v876_v22  ;;  %v675_v22 = vcombine.low %v1172_v6, %v1172_v6 }
  0x96   :  { %723 = vmatpush3.bf16.msk.msra.mxu0 %vm689_vm5, %v813_v60  ;;  %vm407_vm8 = vmand %vm339_vm0, %vm375_vm1  ;;  %vm359_vm0 = vcmp.lt.f32.partialorder %v223_v52, %v882_v25  ;;  %vm427_vm5 = vcmp.ge.f32.partialorder %v287_v58, %v894_v41 }
  0x97   :  { %vm408_vm10 = vmand %vm340_vm3, %vm376_vm4  ;;  %vm360_vm3 = vcmp.lt.f32.partialorder %v224_v54, %v882_v25 }
  0x98   :  { %vm475_vm12 = vmand %vm407_vm8, %vm443_vm7  ;;  %vm428_vm8 = vcmp.ge.f32.partialorder %v288_v59, %v894_v41 }
  0x99   :  { %vm476_vm13 = vmand %vm408_vm10, %vm444_vm9  ;;  %vm495_vm10 = vcmp.lt.f32.partialorder %v287_v58, %v896_v42 }
  0x9a   :  { %vm543_vm14 = vmand %vm475_vm12, %vm511_vm11  ;;  %vm496_vm12 = vcmp.lt.f32.partialorder %v288_v59, %v896_v42 }
  0x9b   :  { %vm544_vm1 = vmand %vm476_vm13, %vm512_vm6 }
  0x9c   :  { %vm707_vm4 = vmpackc.low %vm544_vm1, %vm543_vm14 }
  0x9d   :  { %724 = vmatprep.subr.msk.bf16.mxu0 %vm707_vm4, %v813_v60  ;;  %vm391_vm7 = vmand %vm323_vm15, %vm359_vm0 }
  0x9e   :  { %vm392_vm9 = vmand %vm324_vm2, %vm360_vm3 }
  0x9f   :  { %vm459_vm11 = vmand %vm391_vm7, %vm427_vm5 }
  0xa0   :  { %vm460_vm6 = vmand %vm392_vm9, %vm428_vm8 }
  0xa1   :  { %vm527_vm13 = vmand %vm459_vm11, %vm495_vm10 }
  0xa2   :  { %vm528_vm1 = vmand %vm460_vm6, %vm496_vm12 }
  0xa3   :  { %vm691_vm14 = vmpackc.low %vm528_vm1, %vm527_vm13 }
  0xa4   :  { %725 = vmatpush3.bf16.msk.msra.mxu0 %vm691_vm14, %v813_v60 }
  0xa7   :  { %635 = vmatmul.mubr.bf16.vlgmr.msra.gmra.mrb[0].mxu0 %v675_v22 }
 0x17a   :  { %v726_v25 = vpop.f32.mrb[0].mxu0 }
 0x17b   :  { %v727_v61 = vpop.f32.mrb[1].mxu0 }
 0x17c   :  { %v728_v62 = vadd.f32 %v727_v61, %v726_v25  ;;  %v729_v41 = vpop.f32.mrb[2].mxu0 }
 0x17d   :  { %v730_v63 = vpop.f32.mrb[3].mxu0 }
 0x17e   :  { %v653_v2 = vmul.f32 %v728_v62, %v709_v0 }
 0x180   :  { %654 = vst [vmem:[#allocation7] sm:$0xff] %v653_v2 }
 0x181   :  { %794 = shalt.err (!%p791_p6)
}
 0x182   :  { %s795_s8 = scalar_lea.hbm %s1297_s2, 128 }
 0x183   :  { %p796_p7 = scmp.ne.s32.totalorder %s1297_s2, %s795_s8  ;;  %p799_p8 = scmp.lt.u32.totalorder %s795_s8, %s1297_s2 }
 0x185   :  { %p801_p9 = pnand %p799_p8, %p796_p7 }
 0x187   :  { %804 = shalt.err (!%p801_p9)
}
 0x188   :  { %664 = dma.vmem_to_hbm [thread:$0]  %s662_s4, 128, %s1297_s2, [#allocation4]  }
 0x189   :  { %809 = dma.done.wait [#allocation4], 128  }
 0x18a   :  { %810 = vsyncadd [#allocation4], 4294967168 }
 0x18b   :  { %668 = vsyncpa [#allocation3], 1 }
 0x18c   :  { %669 = vsyncpa [#allocation6], 1 }
 0x18d   :  { %670 = vsyncpa [#allocation4], 1 }

</bundles_post_ra>
